<compile_context>
chip_gen: v5e
topology: v5e:2x2
jax: 0.10.0
libtpu: 0.0.40
codegen_flags: <defaults>
</compile_context>

<pallas_src>
import functools

import jax
import jax.numpy as jnp
from jax.experimental import pallas as pl
from jax.experimental.pallas import tpu as pltpu


LANE = 128        # head (H -> 1) padded to LANE output columns (lane-dense vst)
HP = 128          # hidden_channels padded to one full lane group
GT = 8            # graphs per grid tile (sublane-dense output rows)


# ----------------------------- Pallas kernel -------------------------------

def _gcn_seal_kernel(num_layers, a_ref, x_ref, w_ref, b_ref,
                     lw1_ref, lb1_ref, lw2_ref, lb2_ref, o_ref):
    """One graph tile: L GCN layers -> center pooling -> lin1/ReLU/lin2.

    a_ref : [GT, Np, Np] bf16   normalized adjacency, one subgraph per slice
    x_ref : [GT, Np, HP] f32    z-embedding features (zero-padded columns)
    w_ref : [L, HP, HP]  bf16   GCNConv weights     b_ref : [L, 1, HP] f32
    lw1   : [HP, HP]     bf16   lb1 : [1, HP]  f32
    lw2   : [HP, LANE]   bf16   lb2 : [1, LANE] f32
    o_ref : [GT, LANE]   f32    column 0 holds the real logit
    """
    a = a_ref[...]                                   # bf16 [GT, Np, Np]
    h = x_ref[...]                                   # f32  [GT, Np, HP]
    gt, n_per, hp = h.shape
    for l in range(num_layers):                      # static unrolled layer loop
        w = w_ref[l]                                 # per-layer load (bounds live range)
        xw = jnp.dot(h.reshape(gt * n_per, hp).astype(jnp.bfloat16), w,
                     preferred_element_type=jnp.float32).reshape(gt, n_per, hp)
        h = jnp.einsum('gnk,gkh->gnh', a, xw.astype(jnp.bfloat16),
                       preferred_element_type=jnp.float32) + b_ref[l]
        if l < num_layers - 1:
            h = jnp.maximum(h, 0.0)                  # f32 elementwise (v5e-safe)
            # TODO(synk): F.dropout(p=0.5) is stochastic only in training mode;
            # implemented as identity (inference semantics).
    # SEAL center pooling: the two target nodes are local rows 0 and 1 of every
    # subgraph in this batched layout (np.unique(batch, return_index=True)
    # first-occurrence convention), so the gather is a static slice.
    xc = h[:, 0, :] * h[:, 1, :]                     # f32 [GT, HP]
    h1 = jnp.dot(xc.astype(jnp.bfloat16), lw1_ref[...],
                 preferred_element_type=jnp.float32) + lb1_ref[...]
    h1 = jnp.maximum(h1, 0.0)
    # TODO(synk): second dropout is also identity (inference semantics).
    o_ref[...] = jnp.dot(h1.astype(jnp.bfloat16), lw2_ref[...],
                         preferred_element_type=jnp.float32) + lb2_ref[...]


# ----------------------------- plain-JAX glue -------------------------------

def init_params(key, hidden, num_layers, max_z):
    keys = iter(jax.random.split(key, 2 * num_layers + 6))

    def padded(m, shape):
        out = jnp.zeros(shape, jnp.float32)
        return out.at[tuple(slice(0, s) for s in m.shape)].set(m)

    p = {}
    z_emb = jax.random.normal(next(keys), (max_z, hidden), jnp.float32)
    p["z_emb"] = padded(z_emb, (max_z, HP))                         # f32 [max_z, HP]
    gw, gb = [], []
    for _ in range(num_layers):
        w = jax.random.normal(next(keys), (hidden, hidden), jnp.float32) * 0.2
        b = jax.random.normal(next(keys), (hidden,), jnp.float32) * 0.1
        gw.append(padded(w, (HP, HP)))
        gb.append(padded(b.reshape(1, hidden), (1, HP)))
    p["gcn_w"] = jnp.stack(gw).astype(jnp.bfloat16)                 # bf16 [L, HP, HP]
    p["gcn_b"] = jnp.stack(gb)                                      # f32  [L, 1, HP]
    lw1 = jax.random.normal(next(keys), (hidden, hidden), jnp.float32) * 0.1
    lb1 = jax.random.normal(next(keys), (hidden,), jnp.float32) * 0.1
    lw2 = jax.random.normal(next(keys), (hidden, 1), jnp.float32) * 0.1
    lb2 = jax.random.normal(next(keys), (1,), jnp.float32) * 0.1
    p["lw1"] = padded(lw1, (HP, HP)).astype(jnp.bfloat16)
    p["lb1"] = padded(lb1.reshape(1, hidden), (1, HP))
    p["lw2"] = padded(lw2, (HP, LANE)).astype(jnp.bfloat16)
    p["lb2"] = padded(lb2.reshape(1, 1), (1, LANE))
    return p


def build_batched_inputs(z_emb_pad, z, edge_index, batch, num_graphs, n_per):
    """Pack nodes into a [G, n_per, *] batched layout.

    Assumes `batch` is sorted (SEAL convention: each subgraph's two target
    nodes come first), graphs have <= n_per nodes.
    """
    n = z.shape[0]
    counts = jnp.zeros((num_graphs,), jnp.int32).at[batch].add(1)
    starts = jnp.concatenate([jnp.zeros((1,), jnp.int32),
                              jnp.cumsum(counts)[:-1].astype(jnp.int32)])
    local = jnp.arange(n, dtype=jnp.int32) - starts[batch]
    # Embedding row gather + per-graph scatter: plain-JAX glue (tiny
    # data-dependent gather has no clean Pallas equivalent at this size).
    x0 = jnp.take(z_emb_pad, z, axis=0)                             # [N, HP]
    xb = jnp.zeros((num_graphs, n_per, z_emb_pad.shape[1]), jnp.float32)
    xb = xb.at[batch, local].set(x0)
    # Per-graph D^{-1/2} (A + I) D^{-1/2} (PyG GCNConv default normalization).
    # TODO(synk): assumes edge_index has no pre-existing self loops (PyG's
    # gcn_norm deduplicates them); glue-level only.
    src, dst = edge_index[0], edge_index[1]
    g = batch[src]
    ab = jnp.zeros((num_graphs, n_per, n_per), jnp.float32)
    ab = ab.at[g, dst - starts[g], src - starts[g]].add(1.0)
    ab = ab.at[batch, local, local].add(1.0)                        # self loops (real nodes)
    deg = ab.sum(axis=2)
    dinv = jnp.where(deg > 0, 1.0 / jnp.sqrt(deg), 0.0)
    ab = dinv[:, :, None] * ab * dinv[:, None, :]
    return ab, xb


def gcn_seal_forward(params, z, edge_index, batch, num_graphs, n_per):
    num_layers = params["gcn_w"].shape[0]
    ab, xb = build_batched_inputs(params["z_emb"], z, edge_index, batch,
                                  num_graphs, n_per)
    g_pad = ((num_graphs + GT - 1) // GT) * GT
    if g_pad != num_graphs:
        pad = g_pad - num_graphs
        ab = jnp.pad(ab, ((0, pad), (0, 0), (0, 0)))
        xb = jnp.pad(xb, ((0, pad), (0, 0), (0, 0)))
    ab = ab.astype(jnp.bfloat16)          # bf16 MXU operand; halves adjacency DMA

    n_tiles = g_pad // GT
    flops = g_pad * (num_layers * (2 * n_per * HP * HP + 2 * n_per * n_per * HP)
                     + HP + 2 * HP * HP + 2 * HP * LANE)
    bytes_accessed = (g_pad * n_per * n_per * 2 + g_pad * n_per * HP * 4
                      + num_layers * (HP * HP * 2 + HP * 4)
                      + HP * HP * 2 + HP * 4 + HP * LANE * 2 + LANE * 4
                      + g_pad * LANE * 4)

    grid_spec = pltpu.PrefetchScalarGridSpec(
        num_scalar_prefetch=0,
        grid=(n_tiles,),
        in_specs=[
            pl.BlockSpec((GT, n_per, n_per), lambda g: (g, 0, 0)),   # adjacency tile
            pl.BlockSpec((GT, n_per, HP), lambda g: (g, 0, 0)),      # feature tile
            pl.BlockSpec((num_layers, HP, HP), lambda g: (0, 0, 0)), # resident weights
            pl.BlockSpec((num_layers, 1, HP), lambda g: (0, 0, 0)),
            pl.BlockSpec((HP, HP), lambda g: (0, 0)),
            pl.BlockSpec((1, HP), lambda g: (0, 0)),
            pl.BlockSpec((HP, LANE), lambda g: (0, 0)),
            pl.BlockSpec((1, LANE), lambda g: (0, 0)),
        ],
        out_specs=pl.BlockSpec((GT, LANE), lambda g: (g, 0)),
    )
    out = pl.pallas_call(
        functools.partial(_gcn_seal_kernel, num_layers),
        out_shape=jax.ShapeDtypeStruct((g_pad, LANE), jnp.float32),
        grid_spec=grid_spec,
        compiler_params=pltpu.CompilerParams(
            dimension_semantics=("parallel",)),      # v7x: shard tiles over 2 TCs
        cost_estimate=pl.CostEstimate(flops=flops, transcendentals=0,
                                      bytes_accessed=bytes_accessed),
    )(ab, xb, params["gcn_w"], params["gcn_b"],
      params["lw1"], params["lb1"], params["lw2"], params["lb2"])
    return out[:num_graphs, :1]                      # [B, 1]


# --------------------------- pure-JAX reference -----------------------------

def gcn_norm_dense(edge_index, num_nodes):
    src, dst = edge_index[0], edge_index[1]
    a = jnp.zeros((num_nodes, num_nodes), jnp.float32).at[dst, src].add(1.0)
    a = a + jnp.eye(num_nodes, dtype=jnp.float32)
    deg = a.sum(axis=1)
    dinv = jnp.where(deg > 0, 1.0 / jnp.sqrt(deg), 0.0)
    return dinv[:, None] * a * dinv[None, :]


def ref_forward(params, z, edge_index, batch, num_graphs):
    # f32 reference on the flat (unbatched) layout: cross-checks both the
    # batching glue and the kernel math.
    n = z.shape[0]
    a = gcn_norm_dense(edge_index, n)
    x = jnp.take(params["z_emb"], z, axis=0)
    num_layers = params["gcn_w"].shape[0]
    for l in range(num_layers):
        x = a @ (x @ params["gcn_w"][l].astype(jnp.float32)) + params["gcn_b"][l]
        if l < num_layers - 1:
            x = jnp.maximum(x, 0.0)
    counts = jnp.zeros((num_graphs,), jnp.int32).at[batch].add(1)
    starts = jnp.concatenate([jnp.zeros((1,), jnp.int32),
                              jnp.cumsum(counts)[:-1].astype(jnp.int32)])
    xc = x[starts] * x[starts + 1]
    h = jnp.maximum(xc @ params["lw1"].astype(jnp.float32) + params["lb1"], 0.0)
    return (h @ params["lw2"].astype(jnp.float32) + params["lb2"])[:, :1]


if __name__ == "__main__":
    HIDDEN = 32       # hidden_channels (zero-padded to HP=128 lanes in params)
    NUM_LAYERS = 3
    MAX_Z = 10
    B = 16            # subgraphs in the batch (2 grid tiles of GT=8 graphs)
    N_PER = 8         # nodes per subgraph
    N = B * N_PER

    key = jax.random.PRNGKey(0)
    kz, kp = jax.random.split(key)

    # Deterministic synthetic SEAL batch: a ring per subgraph, symmetric edges,
    # sorted batch vector (center nodes at local positions 0 and 1).
    z = jax.random.randint(kz, (N,), 0, MAX_Z, dtype=jnp.int32)
    batch = jnp.repeat(jnp.arange(B, dtype=jnp.int32), N_PER)
    edges = []
    for g in range(B):
        base = g * N_PER
        for i in range(N_PER):
            j = (i + 1) % N_PER
            edges.append((base + i, base + j))
            edges.append((base + j, base + i))
    edge_index = jnp.array(edges, dtype=jnp.int32).T                # [2, 256]

    params = init_params(kp, HIDDEN, NUM_LAYERS, MAX_Z)

    out = gcn_seal_forward(params, z, edge_index, batch, B, N_PER)
    out = jax.block_until_ready(out)
    assert out.shape == (B, 1), out.shape
    assert bool(jnp.all(jnp.isfinite(out)))

    ref = jax.block_until_ready(ref_forward(params, z, edge_index, batch, B))
    # bf16 MXU operands (f32 accumulation) vs. the pure-f32 reference.
    assert bool(jnp.allclose(out, ref, rtol=5e-2, atol=5e-2)), (out, ref)

    print("KERNEL_OK")
</pallas_src>

<mosaic_0001>
module attributes {stable_mosaic.version = 11 : i64} {
  func.func @_gcn_seal_kernel(%arg0: i32, %arg1: memref<8x8x8xbf16, #tpu.memory_space<vmem>>, %arg2: memref<8x8x128xf32, #tpu.memory_space<vmem>>, %arg3: memref<3x128x128xbf16, #tpu.memory_space<vmem>>, %arg4: memref<3x1x128xf32, #tpu.memory_space<vmem>>, %arg5: memref<128x128xbf16, #tpu.memory_space<vmem>>, %arg6: memref<1x128xf32, #tpu.memory_space<vmem>>, %arg7: memref<128x128xbf16, #tpu.memory_space<vmem>>, %arg8: memref<1x128xf32, #tpu.memory_space<vmem>>, %arg9: memref<8x128xf32, #tpu.memory_space<vmem>>) attributes {dimension_semantics = [#tpu.dimension_semantics<parallel>], iteration_bounds = array<i64: 2>, scalar_prefetch = 0 : i64, scratch_operands = 0 : i64, tpu.core_type = #tpu.core_type<tc>, window_params = [{transform_indices = @transform_0, window_bounds = array<i64: 8, 8, 8>}, {transform_indices = @transform_1, window_bounds = array<i64: 8, 8, 128>}, {pipeline_mode = #tpu.pipeline_mode<synchronous>, transform_indices = @transform_2, window_bounds = array<i64: 3, 128, 128>}, {pipeline_mode = #tpu.pipeline_mode<synchronous>, transform_indices = @transform_3, window_bounds = array<i64: 3, 1, 128>}, {pipeline_mode = #tpu.pipeline_mode<synchronous>, transform_indices = @transform_4, window_bounds = array<i64: 128, 128>}, {pipeline_mode = #tpu.pipeline_mode<synchronous>, transform_indices = @transform_5, window_bounds = array<i64: 1, 128>}, {pipeline_mode = #tpu.pipeline_mode<synchronous>, transform_indices = @transform_6, window_bounds = array<i64: 128, 128>}, {pipeline_mode = #tpu.pipeline_mode<synchronous>, transform_indices = @transform_7, window_bounds = array<i64: 1, 128>}, {transform_indices = @transform_8, window_bounds = array<i64: 8, 128>}]} {
    %c0 = arith.constant 0 : index
    %c0_0 = arith.constant 0 : index
    %c0_1 = arith.constant 0 : index
    %0 = vector.load %arg1[%c0, %c0_0, %c0_1] : memref<8x8x8xbf16, #tpu.memory_space<vmem>>, vector<8x8x8xbf16>
    %c0_2 = arith.constant 0 : index
    %c0_3 = arith.constant 0 : index
    %c0_4 = arith.constant 0 : index
    %1 = vector.load %arg2[%c0_2, %c0_3, %c0_4] : memref<8x8x128xf32, #tpu.memory_space<vmem>>, vector<8x8x128xf32>
    %c0_5 = arith.constant 0 : index
    %c0_6 = arith.constant 0 : index
    %c0_7 = arith.constant 0 : index
    %2 = vector.load %arg3[%c0_5, %c0_6, %c0_7] : memref<3x128x128xbf16, #tpu.memory_space<vmem>>, vector<1x128x128xbf16>
    %3 = vector.shape_cast %2 : vector<1x128x128xbf16> to vector<128x128xbf16>
    %4 = vector.shape_cast %1 : vector<8x8x128xf32> to vector<64x128xf32>
    %5 = arith.truncf %4 : vector<64x128xf32> to vector<64x128xbf16>
    %cst = arith.constant dense<0.000000e+00> : vector<64x128xf32>
    %6 = tpu.matmul %5, %3, %cst {dimension_numbers = #tpu.dot_dimension_numbers<[1], [0], [0], [1], [0, 0, 1, 1], [], []>} : vector<64x128xbf16>, vector<128x128xbf16>, vector<64x128xf32> -> vector<64x128xf32>
    %7 = vector.shape_cast %6 : vector<64x128xf32> to vector<8x8x128xf32>
    %8 = arith.truncf %7 : vector<8x8x128xf32> to vector<8x8x128xbf16>
    "tpu.trace_start"() <{level = 10 : i32, message = "gnk,gkh->gnh"}> : () -> ()
    %cst_8 = arith.constant dense<0.000000e+00> : vector<8x8x128xf32>
    %9 = tpu.matmul %0, %8, %cst_8 {dimension_numbers = #tpu.dot_dimension_numbers<[2], [1], [1], [2], [0, 0, 0, 1, 1, 2], [0], [0]>} : vector<8x8x8xbf16>, vector<8x8x128xbf16>, vector<8x8x128xf32> -> vector<8x8x128xf32>
    "tpu.trace_stop"() : () -> ()
    %c0_9 = arith.constant 0 : index
    %c0_10 = arith.constant 0 : index
    %c0_11 = arith.constant 0 : index
    %10 = vector.load %arg4[%c0_9, %c0_10, %c0_11] : memref<3x1x128xf32, #tpu.memory_space<vmem>>, vector<1x1x128xf32>
    %11 = vector.shape_cast %10 : vector<1x1x128xf32> to vector<1x128xf32>
    %12 = vector.shape_cast %11 : vector<1x128xf32> to vector<1x1x128xf32>
    %13 = vector.broadcast %12 : vector<1x1x128xf32> to vector<8x8x128xf32>
    %14 = arith.addf %9, %13 : vector<8x8x128xf32>
    %cst_12 = arith.constant 0.000000e+00 : f32
    %15 = vector.broadcast %cst_12 : f32 to vector<8x8x128xf32>
    %16 = arith.maximumf %14, %15 : vector<8x8x128xf32>
    %c1 = arith.constant 1 : index
    %c0_13 = arith.constant 0 : index
    %c0_14 = arith.constant 0 : index
    %17 = vector.load %arg3[%c1, %c0_13, %c0_14] : memref<3x128x128xbf16, #tpu.memory_space<vmem>>, vector<1x128x128xbf16>
    %18 = vector.shape_cast %17 : vector<1x128x128xbf16> to vector<128x128xbf16>
    %19 = vector.shape_cast %16 : vector<8x8x128xf32> to vector<64x128xf32>
    %20 = arith.truncf %19 : vector<64x128xf32> to vector<64x128xbf16>
    %cst_15 = arith.constant dense<0.000000e+00> : vector<64x128xf32>
    %21 = tpu.matmul %20, %18, %cst_15 {dimension_numbers = #tpu.dot_dimension_numbers<[1], [0], [0], [1], [0, 0, 1, 1], [], []>} : vector<64x128xbf16>, vector<128x128xbf16>, vector<64x128xf32> -> vector<64x128xf32>
    %22 = vector.shape_cast %21 : vector<64x128xf32> to vector<8x8x128xf32>
    %23 = arith.truncf %22 : vector<8x8x128xf32> to vector<8x8x128xbf16>
    "tpu.trace_start"() <{level = 10 : i32, message = "gnk,gkh->gnh"}> : () -> ()
    %cst_16 = arith.constant dense<0.000000e+00> : vector<8x8x128xf32>
    %24 = tpu.matmul %0, %23, %cst_16 {dimension_numbers = #tpu.dot_dimension_numbers<[2], [1], [1], [2], [0, 0, 0, 1, 1, 2], [0], [0]>} : vector<8x8x8xbf16>, vector<8x8x128xbf16>, vector<8x8x128xf32> -> vector<8x8x128xf32>
    "tpu.trace_stop"() : () -> ()
    %c1_17 = arith.constant 1 : index
    %c0_18 = arith.constant 0 : index
    %c0_19 = arith.constant 0 : index
    %25 = vector.load %arg4[%c1_17, %c0_18, %c0_19] : memref<3x1x128xf32, #tpu.memory_space<vmem>>, vector<1x1x128xf32>
    %26 = vector.shape_cast %25 : vector<1x1x128xf32> to vector<1x128xf32>
    %27 = vector.shape_cast %26 : vector<1x128xf32> to vector<1x1x128xf32>
    %28 = vector.broadcast %27 : vector<1x1x128xf32> to vector<8x8x128xf32>
    %29 = arith.addf %24, %28 : vector<8x8x128xf32>
    %cst_20 = arith.constant 0.000000e+00 : f32
    %30 = vector.broadcast %cst_20 : f32 to vector<8x8x128xf32>
    %31 = arith.maximumf %29, %30 : vector<8x8x128xf32>
    %c2 = arith.constant 2 : index
    %c0_21 = arith.constant 0 : index
    %c0_22 = arith.constant 0 : index
    %32 = vector.load %arg3[%c2, %c0_21, %c0_22] : memref<3x128x128xbf16, #tpu.memory_space<vmem>>, vector<1x128x128xbf16>
    %33 = vector.shape_cast %32 : vector<1x128x128xbf16> to vector<128x128xbf16>
    %34 = vector.shape_cast %31 : vector<8x8x128xf32> to vector<64x128xf32>
    %35 = arith.truncf %34 : vector<64x128xf32> to vector<64x128xbf16>
    %cst_23 = arith.constant dense<0.000000e+00> : vector<64x128xf32>
    %36 = tpu.matmul %35, %33, %cst_23 {dimension_numbers = #tpu.dot_dimension_numbers<[1], [0], [0], [1], [0, 0, 1, 1], [], []>} : vector<64x128xbf16>, vector<128x128xbf16>, vector<64x128xf32> -> vector<64x128xf32>
    %37 = vector.shape_cast %36 : vector<64x128xf32> to vector<8x8x128xf32>
    %38 = arith.truncf %37 : vector<8x8x128xf32> to vector<8x8x128xbf16>
    "tpu.trace_start"() <{level = 10 : i32, message = "gnk,gkh->gnh"}> : () -> ()
    %cst_24 = arith.constant dense<0.000000e+00> : vector<8x8x128xf32>
    %39 = tpu.matmul %0, %38, %cst_24 {dimension_numbers = #tpu.dot_dimension_numbers<[2], [1], [1], [2], [0, 0, 0, 1, 1, 2], [0], [0]>} : vector<8x8x8xbf16>, vector<8x8x128xbf16>, vector<8x8x128xf32> -> vector<8x8x128xf32>
    "tpu.trace_stop"() : () -> ()
    %c2_25 = arith.constant 2 : index
    %c0_26 = arith.constant 0 : index
    %c0_27 = arith.constant 0 : index
    %40 = vector.load %arg4[%c2_25, %c0_26, %c0_27] : memref<3x1x128xf32, #tpu.memory_space<vmem>>, vector<1x1x128xf32>
    %41 = vector.shape_cast %40 : vector<1x1x128xf32> to vector<1x128xf32>
    %42 = vector.shape_cast %41 : vector<1x128xf32> to vector<1x1x128xf32>
    %43 = vector.broadcast %42 : vector<1x1x128xf32> to vector<8x8x128xf32>
    %44 = arith.addf %39, %43 : vector<8x8x128xf32>
    %45 = vector.extract_strided_slice %44 {offsets = [0, 0, 0], sizes = [8, 1, 128], strides = [1, 1, 1]} : vector<8x8x128xf32> to vector<8x1x128xf32>
    %46 = vector.shape_cast %45 : vector<8x1x128xf32> to vector<8x128xf32>
    %47 = vector.extract_strided_slice %44 {offsets = [0, 1, 0], sizes = [8, 1, 128], strides = [1, 1, 1]} : vector<8x8x128xf32> to vector<8x1x128xf32>
    %48 = vector.shape_cast %47 : vector<8x1x128xf32> to vector<8x128xf32>
    %49 = arith.mulf %46, %48 : vector<8x128xf32>
    %50 = arith.truncf %49 : vector<8x128xf32> to vector<8x128xbf16>
    %c0_28 = arith.constant 0 : index
    %c0_29 = arith.constant 0 : index
    %51 = vector.load %arg5[%c0_28, %c0_29] : memref<128x128xbf16, #tpu.memory_space<vmem>>, vector<128x128xbf16>
    %cst_30 = arith.constant dense<0.000000e+00> : vector<8x128xf32>
    %52 = tpu.matmul %50, %51, %cst_30 {dimension_numbers = #tpu.dot_dimension_numbers<[1], [0], [0], [1], [0, 0, 1, 1], [], []>} : vector<8x128xbf16>, vector<128x128xbf16>, vector<8x128xf32> -> vector<8x128xf32>
    %c0_31 = arith.constant 0 : index
    %c0_32 = arith.constant 0 : index
    %53 = vector.load %arg6[%c0_31, %c0_32] : memref<1x128xf32, #tpu.memory_space<vmem>>, vector<1x128xf32>
    %54 = vector.broadcast %53 : vector<1x128xf32> to vector<8x128xf32>
    %55 = arith.addf %52, %54 : vector<8x128xf32>
    %cst_33 = arith.constant 0.000000e+00 : f32
    %56 = vector.broadcast %cst_33 : f32 to vector<8x128xf32>
    %57 = arith.maximumf %55, %56 : vector<8x128xf32>
    %58 = arith.truncf %57 : vector<8x128xf32> to vector<8x128xbf16>
    %c0_34 = arith.constant 0 : index
    %c0_35 = arith.constant 0 : index
    %59 = vector.load %arg7[%c0_34, %c0_35] : memref<128x128xbf16, #tpu.memory_space<vmem>>, vector<128x128xbf16>
    %cst_36 = arith.constant dense<0.000000e+00> : vector<8x128xf32>
    %60 = tpu.matmul %58, %59, %cst_36 {dimension_numbers = #tpu.dot_dimension_numbers<[1], [0], [0], [1], [0, 0, 1, 1], [], []>} : vector<8x128xbf16>, vector<128x128xbf16>, vector<8x128xf32> -> vector<8x128xf32>
    %c0_37 = arith.constant 0 : index
    %c0_38 = arith.constant 0 : index
    %61 = vector.load %arg8[%c0_37, %c0_38] : memref<1x128xf32, #tpu.memory_space<vmem>>, vector<1x128xf32>
    %62 = vector.broadcast %61 : vector<1x128xf32> to vector<8x128xf32>
    %63 = arith.addf %60, %62 : vector<8x128xf32>
    %c0_39 = arith.constant 0 : index
    %c0_40 = arith.constant 0 : index
    %64 = vector.load %arg9[%c0_39, %c0_40] : memref<8x128xf32, #tpu.memory_space<vmem>>, vector<8x128xf32>
    tpu.vector_store %arg9[%c0_39, %c0_40], %63 {strides = array<i32>} : memref<8x128xf32, #tpu.memory_space<vmem>>, vector<8x128xf32>,
    return
  }
  func.func @transform_0(%arg0: i32) -> (i32, i32, i32) {
    %c0_i32 = arith.constant 0 : i32
    %c0_i32_0 = arith.constant 0 : i32
    %c0_i32_1 = arith.constant 0 : i32
    return %arg0, %c0_i32, %c0_i32_0 : i32, i32, i32
  }
  func.func @transform_1(%arg0: i32) -> (i32, i32, i32) {
    %c0_i32 = arith.constant 0 : i32
    %c0_i32_0 = arith.constant 0 : i32
    %c0_i32_1 = arith.constant 0 : i32
    return %arg0, %c0_i32, %c0_i32_0 : i32, i32, i32
  }
  func.func @transform_2(%arg0: i32) -> (i32, i32, i32) {
    %c0_i32 = arith.constant 0 : i32
    %c0_i32_0 = arith.constant 0 : i32
    %c0_i32_1 = arith.constant 0 : i32
    %c0_i32_2 = arith.constant 0 : i32
    return %c0_i32, %c0_i32_0, %c0_i32_1 : i32, i32, i32
  }
  func.func @transform_3(%arg0: i32) -> (i32, i32, i32) {
    %c0_i32 = arith.constant 0 : i32
    %c0_i32_0 = arith.constant 0 : i32
    %c0_i32_1 = arith.constant 0 : i32
    %c0_i32_2 = arith.constant 0 : i32
    return %c0_i32, %c0_i32_0, %c0_i32_1 : i32, i32, i32
  }
  func.func @transform_4(%arg0: i32) -> (i32, i32) {
    %c0_i32 = arith.constant 0 : i32
    %c0_i32_0 = arith.constant 0 : i32
    %c0_i32_1 = arith.constant 0 : i32
    return %c0_i32, %c0_i32_0 : i32, i32
  }
  func.func @transform_5(%arg0: i32) -> (i32, i32) {
    %c0_i32 = arith.constant 0 : i32
    %c0_i32_0 = arith.constant 0 : i32
    %c0_i32_1 = arith.constant 0 : i32
    return %c0_i32, %c0_i32_0 : i32, i32
  }
  func.func @transform_6(%arg0: i32) -> (i32, i32) {
    %c0_i32 = arith.constant 0 : i32
    %c0_i32_0 = arith.constant 0 : i32
    %c0_i32_1 = arith.constant 0 : i32
    return %c0_i32, %c0_i32_0 : i32, i32
  }
  func.func @transform_7(%arg0: i32) -> (i32, i32) {
    %c0_i32 = arith.constant 0 : i32
    %c0_i32_0 = arith.constant 0 : i32
    %c0_i32_1 = arith.constant 0 : i32
    return %c0_i32, %c0_i32_0 : i32, i32
  }
  func.func @transform_8(%arg0: i32) -> (i32, i32) {
    %c0_i32 = arith.constant 0 : i32
    %c0_i32_0 = arith.constant 0 : i32
    return %arg0, %c0_i32 : i32, i32
  }
}

</mosaic_0001>

<bundles_post_ra>
// kernel: tpu_custom_call.1
= control target key start
LH: loop header
LB: loop body
LE: loop exit
PB: predicated region body
PF: predicated region fallthrough
CT: control target
= control target key end

     0   :  { %s2349_s0 = inlined_call_operand.vmem [shape: bf16[16,8,8], index: 0, kind: input, shape index: {}]   ;;  %s2350_s1 = inlined_call_operand.hbm [shape: f32[16,8,128], index: 1, kind: input, shape index: {}]   ;;  %s2351_s2 = inlined_call_operand.hbm [shape: bf16[3,128,128], index: 2, kind: input, shape index: {}]   ;;  %s2352_s3 = inlined_call_operand.vmem [shape: f32[3,1,128], index: 3, kind: input, shape index: {}]   ;;  %s2353_s4 = inlined_call_operand.vmem [shape: bf16[128,128], index: 4, kind: input, shape index: {}]   ;;  %s2354_s5 = inlined_call_operand.vmem [shape: f32[1,128], index: 5, kind: input, shape index: {}]   ;;  %s2355_s6 = inlined_call_operand.hbm [shape: bf16[128,128], index: 6, kind: input, shape index: {}]   ;;  %s2356_s7 = inlined_call_operand.vmem [shape: f32[1,128], index: 7, kind: input, shape index: {}]   ;;  %s2357_s8 = inlined_call_operand.hbm [shape: f32[16,128], index: 8, kind: output, shape index: {}]  }
   0x1   :  { %2358 = sst [smem:[#allocation12_spill]] %s2351_s2 }
   0x2   :  { %2359 = sst [smem:[#allocation13_spill]] %s2355_s6 }
   0x3   :  { %13 = vsyncpa [#allocation3], 0 }
   0x4   :  { %15 = vsyncpa [#allocation3 + $0x1], 0 }
   0x5   :  { %16 = vsyncpa [#allocation6], 0 }
   0x6   :  { %17 = vsyncpa [#allocation4], 0 }
   0x7   :  { %19 = vsyncpa [#allocation4 + $0x1], 0  ;;  %s2052_s27 = smov 0   ;;  %s2054_s28 = smov 0  }
   0x8   :  { %s2056_s29 = smov 0   ;;  %s2058_s30 = smov 0  }
   0x9 LB: > { %s2073_s9 = sadd.s32 4294967295, %s1999_s30   ;;  %s1517_s10 = sadd.s32 4294967294, %s1999_s30   ;;  %s1999_s30 = sphi %s2058_s30, %s2371_s30   ;;  %s1995_s29 = sphi %s2056_s29, %s2370_s29   ;;  %s1991_s28 = sphi %s2054_s28, %s2369_s28   ;;  %s1987_s27 = sphi %s2052_s27, %s2368_s27  }
   0xa   : > { %p71_p0 = scmp.ne.s32.totalorder %s1991_s28, %s1987_s27  ;;  %p72_p1 = scmp.eq.s32.totalorder %s2073_s9, 0 }
   0xb   : > { %p221_p2 = scmp.eq.s32.totalorder %s2073_s9, 1  ;;  %p227_p3 = scmp.eq.s32.totalorder %s1517_s10, 1 }
   0xc   : > { %p2082_p4 = por %p72_p1, %p71_p0  ;;  %p1518_p5 = scmp.ge.s32.totalorder %s1999_s30, 1 }
   0xd   : > { %p2087_p6 = por %p227_p3, %p71_p0  ;;  %p234_p7 = scmp.lt.s32.totalorder %s1999_s30, 3 }
   0xe   : > { %s2362_s2 = sld [smem:[#allocation12_spill]]  ;;  %s2001_s17 = smov [#allocation5]  }
   0xf   : > { %p2095_p8 = pnand %p1518_p5, %p234_p7  ;;  %s247_s18 = sshll.u32 %s2001_s17, 4  ;;  %s248_s18 = int_to_ptr.vmem [resolvable:$true] %s247_s18 }
  0x10   : > { %s2364_s6 = sld [smem:[#allocation13_spill]]  ;;  %s2002_s22 = smov 64  }
  0x11   : > { %p1775_p9 = pneg %p2095_p8  ;;  %s2003_s23 = smov 4  }
  0x12   : > { %s2004_s24 = smov [#allocation7]   ;;  %s2108_s26 = sadd.s32 1, %s1999_s30  }
  0x13   : > { %p1776_p10 = pnand %p1775_p9, %p72_p1  ;;  %s270_s25 = sshll.u32 %s2004_s24, 4  ;;  %s271_s25 = int_to_ptr.vmem [resolvable:$true] %s270_s25 }
  0x14   : > { %s245_s15 = sshll.u32 %s2362_s2, 4  ;;  %s58_s10 = sadd.s32 1, %s1995_s29  ;;  %s246_s15 = int_to_ptr.hbm [resolvable:$true] %s245_s15 }
  0x15   : > { %1778 = dma.hbm_to_vmem [thread:$0]  (!%p1776_p10), %s246_s15, 3072, %s248_s18, [#allocation6], %s2002_s22, %s2002_s22, %s2003_s23  }
  0x16   : > { %s268_s21 = sshll.u32 %s2364_s6, 4  ;;  %s55_s13 = ssub.s32 %s1999_s30, %s2108_s26  ;;  %s269_s21 = int_to_ptr.hbm [resolvable:$true] %s268_s21 }
  0x17   : > { %1781 = dma.hbm_to_vmem [thread:$0]  (!%p1776_p10), %s269_s21, 1024, %s271_s25, [#allocation6], %s2002_s22, %s2002_s22, %s2003_s23  }
  0x18   : > { %p65_p12 = scmp.ne.s32.totalorder %s1995_s29, %s1991_s28  ;;  %p56_p13 = scmp.eq.s32.totalorder %s55_s13, 0 }
  0x19   : > { %p66_p0 = scmp.eq.s32.totalorder %s1999_s30, 0  ;;  %p1792_p5 = scmp.lt.s32.totalorder %s1999_s30, 2 }
  0x1a   : > { %p2118_p3 = por %p221_p2, %p65_p12  ;;  %s296_s17 = sand.u32 1, %s1995_s29  }
  0x1b   : > { %s2124_s15 = scalar_select %p56_p13, %s1995_s29, %s58_s10  }
  0x1c   : > { %p67_p7 = por %p66_p0, %p65_p12  ;;  %s1522_s18 = sshll.u32 %s296_s17, 6 }
  0x1d   : > { %s1722_s19 = sshll.u32 %s1999_s30, 6  ;;  %s300_s23 = scalar_lea.vmem [#allocation2], %s1522_s18 }
  0x1e   : > { %s305_s22 = scalar_lea.hbm %s2350_s1, %s1722_s19  ;;  %s308_s24 = sshll.u32 %s300_s23, 4  ;;  %s309_s24 = int_to_ptr.vmem [resolvable:$true] %s308_s24 }
  0x1f   : > { %s306_s25 = sshll.u32 %s305_s22, 4  ;;  %p2131_p2 = pnand %p1792_p5, %p67_p7  ;;  %s307_s25 = int_to_ptr.hbm [resolvable:$true] %s306_s25 }
  0x20   : > { %s297_s10 = scalar_lea.sflag [#allocation3], %s296_s17  ;;  %s1899_s2 = sshra.s32 %s307_s25, 4  ;;  %s1900_s2 = int_to_ptr.hbm [resolvable:$true] %s1899_s2 }
  0x21   : > { %s1901_s6 = scalar_lea.hbm %s1900_s2, 64  ;;  %p1903_p10 = pneg %p2131_p2 }
  0x22   : > { %p1902_p9 = scmp.ne.s32.totalorder %s1900_s2, %s1901_s6  ;;  %s1906_s20 = scalar_lea.hbm %s2350_s1, 128 }
  0x23   : > { %p1907_p0 = scmp.lt.s32.totalorder %s1900_s2, %s2350_s1  ;;  %p1908_p5 = scmp.lt.s32.totalorder %s1906_s20, %s1901_s6 }
  0x24   : > { %p1904_p12 = pnand %p1903_p10, %p1902_p9 }
  0x25   : > { %p1909_p7 = por %p1908_p5, %p1907_p0 }
  0x26   : > { %p1905_p13 = pneg %p1904_p12 }
  0x28   : > { %p1910_p11 = pnand %p1909_p7, %p1905_p13 }
  0x2a   : > { %1913 = shalt.err (!%p1910_p11)
}
  0x2b   : > { %s2005_s17 = smov 128   ;;  %s2006_s23 = smov 8  }
  0x2c   : > { %1785 = dma.hbm_to_vmem [thread:$0]  (!%p2131_p2), %s307_s25, 1024, %s309_s24, %s297_s10, %s2005_s17, %s2005_s17, %s2006_s23  }
  0x2d   : > { %320 = sbr.rel (%p2095_p8) target bundleno = 1256 (0x4e8), region = 52  ;;  %s2148_s19 = sand.u32 (!%p2095_p8), 1, %s1991_s28  }
  0x2e   : > { %s1526_s18 = sshll.u32 (!%p2095_p8), %s2148_s19, 6  ;;  %s323_s2 = scalar_lea.sflag (!%p2095_p8), [#allocation3], %s2148_s19 }
  0x2f   : > { %s2152_s6 = scalar_lea.vmem (!%p2095_p8), [#allocation2], %s1526_s18 }
  0x32   : > { %1974 = dma.done.wait (%p2082_p4), %s323_s2, 1024  }
  0x33   : > { %1976 = vsyncadd (%p2082_p4), %s323_s2, 4294966272 }
  0x34   : > { %1978 = dma.done.wait (%p72_p1), [#allocation6], 4096  }
  0x35   : > { %1980 = vsyncadd (%p72_p1), [#allocation6], 4294963200  ;;  %v1730_v0 = vld [vmem:[#allocation5 + $0x38] sm:$0xff]  ;;  %v1729_v1 = vld [vmem:[#allocation5 + $0x30] sm:$0xff]  ;;  %s2171_s11 = sshll.u32 %s2073_s9, 3  ;;  %vm512_vm0 = vcmask 1043456  }
  0x36   : > { %467 = vmatpush.bf16.msra.mxu0 %v1730_v0  ;;  %v1728_v2 = vld [vmem:[#allocation5 + $0x28] sm:$0xff]  ;;  %v1727_v3 = vld [vmem:[#allocation5 + $0x20] sm:$0xff]  ;;  %v1726_v4 = vld [vmem:[#allocation5 + $0x18] sm:$0xff]  ;;  %p376_p1 = scmp.lt.s32.totalorder %s2171_s11, 15  ;;  %vm508_vm1 = vcmask 64512   ;;  %vm1233_vm2 = vcmask 1041409  }
  0x37   : > { %v1725_v5 = vld [vmem:[#allocation5 + $0x10] sm:$0xff]  ;;  %v1724_v6 = vld [vmem:[#allocation5 + $0x8] sm:$0xff]  ;;  %v1723_v7 = vld [vmem:[#allocation5] sm:$0xff]  ;;  %vm1236_vm3 = vcmask 1042434   ;;  %vm1239_vm4 = vcmask 1043459   ;;  %vm1242_vm5 = vcmask 1044484  }
  0x38   : > { %v391_v8 = vld [vmem:[%s2152_s6] sm:$0xff]  ;;  %v392_v9 = vld [vmem:[%s2152_s6 + $0x8] sm:$0xff]  ;;  %v393_v11 = vld [vmem:[%s2152_s6 + $0x10] sm:$0xff]  ;;  %s377_s16 = scalar_select %p376_p1, %s2171_s11, 15  ;;  %vm1245_vm6 = vcmask 1045509   ;;  %vm1248_vm7 = vcmask 1046534  }
  0x39   : > { %v415_v10 = vpack.c.bf16 %v392_v9, %v391_v8  ;;  %v394_v12 = vld [vmem:[%s2152_s6 + $0x18] sm:$0xff]  ;;  %v395_v14 = vld [vmem:[%s2152_s6 + $0x20] sm:$0xff]  ;;  %v396_v15 = vld [vmem:[%s2152_s6 + $0x28] sm:$0xff]  ;;  %vm1251_vm8 = vcmask 1047559   ;;  %s1401_s23 = scalar_lea.sflag [#allocation4], %s2148_s19 }
  0x3a   : > { %468 = vmatpush.bf16.msra.mxu0 %v1729_v1  ;;  %v416_v13 = vpack.c.bf16 %v394_v12, %v393_v11  ;;  %v417_v16 = vpack.c.bf16 %v396_v15, %v395_v14  ;;  %v397_v17 = vld [vmem:[%s2152_s6 + $0x30] sm:$0xff]  ;;  %v398_v18 = vld [vmem:[%s2152_s6 + $0x38] sm:$0xff]  ;;  %s1531_s24 = sshll.u32 %s377_s16, 2  ;;  %v1736_v48 = vld [vmem:[#allocation5 + $0x68] sm:$0xff]  ;;  %s1949_s16 = scalar_lea.hbm %s2357_s8, 16 }
  0x3b   : > { %v418_v19 = vpack.c.bf16 %v398_v18, %v397_v17  ;;  %s2178_s10 = scalar_lea.vmem %s2349_s0, %s1531_s24  ;;  %v1738_v42 = vld [vmem:[#allocation5 + $0x78] sm:$0xff]  ;;  %v1737_v45 = vld [vmem:[#allocation5 + $0x70] sm:$0xff]  ;;  %v1735_v51 = vld [vmem:[#allocation5 + $0x60] sm:$0xff]  ;;  %s1529_s24 = sshll.u32 %s2148_s19, 3 }
  0x3c   : > { %v2182_v23 = vld [vmem:[%s2178_s10] sm:$0xf]  ;;  %v2188_v27 = vld [vmem:[%s2178_s10 + $0x4] sm:$0xf]  ;;  %v2194_v31 = vld [vmem:[%s2178_s10 + $0x8] sm:$0xf] }
  0x3d   : > { %v2200_v35 = vld [vmem:[%s2178_s10 + $0xc] sm:$0xf]  ;;  %v2206_v39 = vld [vmem:[%s2178_s10 + $0x10] sm:$0xf]  ;;  %v2212_v44 = vld [vmem:[%s2178_s10 + $0x14] sm:$0xf] }
  0x3e   : > { %469 = vmatpush.bf16.msra.mxu0 %v1728_v2  ;;  %v2218_v50 = vld [vmem:[%s2178_s10 + $0x18] sm:$0xf]  ;;  %v2224_v55 = vld [vmem:[%s2178_s10 + $0x1c] sm:$0xf]  ;;  %v1733_v57 = vld [vmem:[#allocation5 + $0x50] sm:$0xff]  ;;  %s1411_s10 = scalar_lea.hbm %s2357_s8, %s2171_s11  ;;  %s374_s21 = scalar_lea.vmem [#allocation8], %s1529_s24 }
  0x3f   : > { %v1734_v56 = vld [vmem:[#allocation5 + $0x58] sm:$0xff]  ;;  %v1732_v58 = vld [vmem:[#allocation5 + $0x48] sm:$0xff]  ;;  %v1731_v59 = vld [vmem:[#allocation5 + $0x40] sm:$0xff]  ;;  %s1413_s22 = sshll.u32 %s374_s21, 4  ;;  %s1415_s17 = sshll.u32 %s1411_s10, 4  ;;  %s1414_s22 = int_to_ptr.vmem [resolvable:$true] %s1413_s22  ;;  %s1416_s17 = int_to_ptr.hbm [resolvable:$true] %s1415_s17 }
  0x40   : > { %v1834_v61 = vld [vmem:[%s2352_s3] ss:$0 sm:$0xff]  ;;  %s1943_s18 = sshra.s32 %s1416_s17, 4  ;;  %s1944_s18 = int_to_ptr.hbm [resolvable:$true] %s1943_s18 }
  0x41   : > { %s1945_s2 = scalar_lea.hbm %s1944_s18, 8  ;;  %p1950_p2 = scmp.lt.s32.totalorder %s1944_s18, %s2357_s8 }
  0x42   : > { %470 = vmatpush.bf16.msra.mxu0 %v1727_v3  ;;  %p1946_p4 = scmp.ne.s32.totalorder %s1944_s18, %s1945_s2  ;;  %p1951_p9 = scmp.lt.s32.totalorder %s1949_s16, %s1945_s2 }
  0x44   : > { %p1947_p8 = pnand %p1946_p4, %p2118_p3  ;;  %p1952_p10 = por %p1951_p9, %p1950_p2 }
  0x46   : > { %471 = vmatpush.bf16.msra.mxu0 %v1726_v4  ;;  %p1948_p11 = pneg %p1947_p8 }
  0x48   : > { %p1953_p12 = pnand %p1952_p10, %p1948_p11 }
  0x4a   : > { %472 = vmatpush.bf16.msra.mxu0 %v1725_v5 }
  0x4e   : > { %473 = vmatpush.bf16.msra.mxu0 %v1724_v6 }
  0x52   : > { %474 = vmatpush.bf16.msra.mxu0 %v1723_v7 }
  0x55   : > { %475 = vmatmul.bf16.vlgmr.msra.gmra.mxu0 %v415_v10 }
  0x65   : > { %480 = vmatmul.bf16.gmra.mxu0 %v416_v13 }
  0x75   : > { %485 = vmatmul.bf16.gmra.mxu0 %v417_v16 }
  0x85   : > { %490 = vmatmul.bf16.gmra.mxu0 %v418_v19 }
  0xd2   : > { %v476_v20 = vpop.f32.mrf.mxu0 }
  0xd3   : > { %v496_v21 = vpack.c.bf16 %v476_v20, %v476_v20 }
  0xd5   : > { %v514_v22 = vsel %vm512_vm0, %v496_v21, 0 }
  0xd6   : > { %523 = vmatpush.bf16.msra.mxu1 %v514_v22 }
  0xd9   : > { %1564 = vmatmul.msk.bf16.vlgmr.msra.gmra.mxu1 %vm508_vm1, %v2182_v23 }
  0xda   : > { %v478_v24 = vpop.f32.mrf.mxu0 }
  0xdb   : > { %v497_v25 = vpack.c.bf16 %v478_v24, %v478_v24 }
  0xdd   : > { %v533_v26 = vsel %vm512_vm0, %v497_v25, 0 }
  0xde   : > { %542 = vmatpush.bf16.msra.mxu2 %v533_v26 }
  0xe1   : > { %1565 = vmatmul.msk.bf16.vlgmr.msra.gmra.mxu2 %vm508_vm1, %v2188_v27 }
  0xe2   : > { %v481_v28 = vpop.f32.mrf.mxu0 }
  0xe3   : > { %v498_v29 = vpack.c.bf16 %v481_v28, %v481_v28 }
  0xe5   : > { %v552_v30 = vsel %vm512_vm0, %v498_v29, 0 }
  0xe6   : > { %561 = vmatpush.bf16.msra.mxu3 %v552_v30 }
  0xe9   : > { %1566 = vmatmul.msk.bf16.vlgmr.msra.gmra.mxu3 %vm508_vm1, %v2194_v31 }
  0xea   : > { %v483_v32 = vpop.f32.mrf.mxu0 }
  0xeb   : > { %v499_v33 = vpack.c.bf16 %v483_v32, %v483_v32 }
  0xed   : > { %v571_v34 = vsel %vm512_vm0, %v499_v33, 0 }
  0xee   : > { %580 = vmatpush.bf16.msrb.mxu1 %v571_v34 }
  0xf1   : > { %1567 = vmatmul.msk.bf16.vlgmr.msrb.gmra.mxu1 %vm508_vm1, %v2200_v35 }
  0xf2   : > { %v486_v36 = vpop.f32.mrf.mxu0 }
  0xf3   : > { %v500_v37 = vpack.c.bf16 %v486_v36, %v486_v36 }
  0xf5   : > { %v590_v38 = vsel %vm512_vm0, %v500_v37, 0 }
  0xf6   : > { %599 = vmatpush.bf16.msrb.mxu2 %v590_v38 }
  0xf9   : > { %1568 = vmatmul.msk.bf16.vlgmr.msrb.gmra.mxu2 %vm508_vm1, %v2206_v39 }
  0xfa   : > { %v488_v40 = vpop.f32.mrf.mxu0 }
  0xfb   : > { %v501_v41 = vpack.c.bf16 %v488_v40, %v488_v40 }
  0xfd   : > { %v609_v43 = vsel %vm512_vm0, %v501_v41, 0 }
  0xfe   : > { %618 = vmatpush.bf16.msrb.mxu3 %v609_v43 }
 0x101   : > { %1569 = vmatmul.msk.bf16.vlgmr.msrb.gmra.mxu3 %vm508_vm1, %v2212_v44 }
 0x102   : > { %739 = vmatpush.bf16.msra.mxu3 %v1738_v42  ;;  %v491_v46 = vpop.f32.mrf.mxu0 }
 0x103   : > { %v502_v47 = vpack.c.bf16 %v491_v46, %v491_v46 }
 0x105   : > { %v628_v49 = vsel %vm512_vm0, %v502_v47, 0 }
 0x106   : > { %740 = vmatpush.bf16.msra.mxu3 %v1737_v45  ;;  %637 = vmatpush.bf16.msra.mxu1 %v628_v49 }
 0x109   : > { %1570 = vmatmul.msk.bf16.vlgmr.msra.gmra.mxu1 %vm508_vm1, %v2218_v50 }
 0x10a   : > { %741 = vmatpush.bf16.msra.mxu3 %v1736_v48  ;;  %v493_v52 = vpop.f32.mrf.mxu0 }
 0x10b   : > { %v503_v53 = vpack.c.bf16 %v493_v52, %v493_v52 }
 0x10d   : > { %v647_v54 = vsel %vm512_vm0, %v503_v53, 0 }
 0x10e   : > { %742 = vmatpush.bf16.msra.mxu3 %v1735_v51  ;;  %656 = vmatpush.bf16.msra.mxu2 %v647_v54 }
 0x111   : > { %1571 = vmatmul.msk.bf16.vlgmr.msra.gmra.mxu2 %vm508_vm1, %v2224_v55 }
 0x112   : > { %743 = vmatpush.bf16.msra.mxu3 %v1734_v56 }
 0x116   : > { %744 = vmatpush.bf16.msra.mxu3 %v1733_v57 }
 0x11a   : > { %745 = vmatpush.bf16.msra.mxu3 %v1732_v58  ;;  %v1746_v58 = vld [vmem:[#allocation5 + $0xb8] sm:$0xff] }
 0x11e   : > { %746 = vmatpush.bf16.msra.mxu3 %v1731_v59 }
 0x156   : > { %v525_v60 = vpop.f32.mrf.mxu1 }
 0x157   : > { %v526_v63 = vadd.f32 %v1834_v61, %v525_v60  ;;  %v1745_v60 = vld [vmem:[#allocation5 + $0xb0] sm:$0xff] }
 0x159   : > { %v662_v1 = vmax.f32 %v526_v63, 0.0  ;;  %v1744_v63 = vld [vmem:[#allocation5 + $0xa8] sm:$0xff] }
 0x15e   : > { %v527_v62 = vpop.f32.mrf.mxu1 }
 0x164   : > { %v544_v0 = vpop.f32.mrf.mxu2 }
 0x165   : > { %v545_v2 = vadd.f32 %v1834_v61, %v544_v0 }
 0x167   : > { %v663_v3 = vmax.f32 %v545_v2, 0.0 }
 0x169   : > { %v687_v4 = vpack.c.bf16 %v663_v3, %v662_v1  ;;  %v1743_v1 = vld [vmem:[#allocation5 + $0xa0] sm:$0xff] }
 0x16b   : > { %747 = vmatmul.bf16.vlgmr.msra.gmra.mxu3 %v687_v4 }
 0x16c   : > { %v546_v5 = vpop.f32.mrf.mxu2  ;;  %v563_v6 = vpop.f32.mrf.mxu3 }
 0x16d   : > { %v564_v8 = vadd.f32 %v1834_v61, %v563_v6  ;;  %v1742_v5 = vld [vmem:[#allocation5 + $0x98] sm:$0xff]  ;;  %v1741_v6 = vld [vmem:[#allocation5 + $0x90] sm:$0xff] }
 0x16e   : > { %v582_v7 = vpop.f32.mrf.mxu1 }
 0x16f   : > { %v583_v9 = vadd.f32 %v1834_v61, %v582_v7  ;;  %v664_v10 = vmax.f32 %v564_v8, 0.0  ;;  %v1740_v7 = vld [vmem:[#allocation5 + $0x88] sm:$0xff]  ;;  %v1739_v8 = vld [vmem:[#allocation5 + $0x80] sm:$0xff] }
 0x171   : > { %v665_v11 = vmax.f32 %v583_v9, 0.0 }
 0x173   : > { %v688_v14 = vpack.c.bf16 %v665_v11, %v664_v10  ;;  %v1835_v11 = vld [vmem:[%s2352_s3 + $0x1] ss:$0 sm:$0xff] }
 0x174   : > { %v565_v12 = vpop.f32.mrf.mxu3 }
 0x176   : > { %v584_v13 = vpop.f32.mrf.mxu1 }
 0x17b   : > { %752 = vmatmul.bf16.gmra.mxu3 %v688_v14 }
 0x17c   : > { %v601_v15 = vpop.f32.mrf.mxu2 }
 0x17d   : > { %v602_v16 = vadd.f32 %v1834_v61, %v601_v15 }
 0x17f   : > { %v666_v19 = vmax.f32 %v602_v16, 0.0 }
 0x184   : > { %v620_v17 = vpop.f32.mrf.mxu3  ;;  %v603_v18 = vpop.f32.mrf.mxu2 }
 0x185   : > { %v621_v20 = vadd.f32 %v1834_v61, %v620_v17 }
 0x186   : > { %v639_v21 = vpop.f32.mrf.mxu1 }
 0x187   : > { %v667_v22 = vmax.f32 %v621_v20, 0.0  ;;  %v640_v28 = vadd.f32 %v1834_v61, %v639_v21 }
 0x189   : > { %v689_v24 = vpack.c.bf16 %v667_v22, %v666_v19  ;;  %v668_v30 = vmax.f32 %v640_v28, 0.0 }
 0x18b   : > { %757 = vmatmul.bf16.gmra.mxu3 %v689_v24 }
 0x18c   : > { %v622_v25 = vpop.f32.mrf.mxu3 }
 0x18e   : > { %v641_v26 = vpop.f32.mrf.mxu1 }
 0x194   : > { %v658_v29 = vpop.f32.mrf.mxu2 }
 0x195   : > { %v659_v32 = vadd.f32 %v1834_v61, %v658_v29 }
 0x197   : > { %v669_v33 = vmax.f32 %v659_v32, 0.0 }
 0x199   : > { %v690_v34 = vpack.c.bf16 %v669_v33, %v668_v30 }
 0x19b   : > { %762 = vmatmul.bf16.gmra.mxu3 %v690_v34 }
 0x19c   : > { %v660_v36 = vpop.f32.mrf.mxu2 }
 0x1ee   : > { %v748_v37 = vpop.f32.mrf.mxu3 }
 0x1ef   : > { %v768_v38 = vpack.c.bf16 %v748_v37, %v748_v37 }
 0x1f1   : > { %v782_v40 = vsel %vm512_vm0, %v768_v38, 0 }
 0x1f2   : > { %791 = vmatpush.bf16.msrb.mxu1 %v782_v40 }
 0x1f5   : > { %1605 = vmatmul.msk.bf16.vlgmr.msrb.gmra.mxu1 %vm508_vm1, %v2182_v23 }
 0x1f6   : > { %v750_v41 = vpop.f32.mrf.mxu3 }
 0x1f7   : > { %v769_v42 = vpack.c.bf16 %v750_v41, %v750_v41 }
 0x1f9   : > { %v798_v43 = vsel %vm512_vm0, %v769_v42, 0 }
 0x1fa   : > { %807 = vmatpush.bf16.msrb.mxu2 %v798_v43 }
 0x1fd   : > { %1606 = vmatmul.msk.bf16.vlgmr.msrb.gmra.mxu2 %vm508_vm1, %v2188_v27 }
 0x1fe   : > { %v753_v45 = vpop.f32.mrf.mxu3 }
 0x1ff   : > { %v770_v46 = vpack.c.bf16 %v753_v45, %v753_v45 }
 0x201   : > { %v814_v47 = vsel %vm512_vm0, %v770_v46, 0 }
 0x202   : > { %823 = vmatpush.bf16.msra.mxu1 %v814_v47 }
 0x205   : > { %1607 = vmatmul.msk.bf16.vlgmr.msra.gmra.mxu1 %vm508_vm1, %v2194_v31 }
 0x206   : > { %v755_v48 = vpop.f32.mrf.mxu3 }
 0x207   : > { %v771_v49 = vpack.c.bf16 %v755_v48, %v755_v48 }
 0x209   : > { %v830_v51 = vsel %vm512_vm0, %v771_v49, 0 }
 0x20a   : > { %839 = vmatpush.bf16.msra.mxu2 %v830_v51 }
 0x20d   : > { %1608 = vmatmul.msk.bf16.vlgmr.msra.gmra.mxu2 %vm508_vm1, %v2200_v35 }
 0x20e   : > { %v758_v52 = vpop.f32.mrf.mxu3 }
 0x20f   : > { %v772_v53 = vpack.c.bf16 %v758_v52, %v758_v52 }
 0x211   : > { %v846_v54 = vsel %vm512_vm0, %v772_v53, 0 }
 0x212   : > { %855 = vmatpush.bf16.msrb.mxu1 %v846_v54 }
 0x215   : > { %1609 = vmatmul.msk.bf16.vlgmr.msrb.gmra.mxu1 %vm508_vm1, %v2206_v39 }
 0x216   : > { %v760_v56 = vpop.f32.mrf.mxu3 }
 0x217   : > { %v773_v57 = vpack.c.bf16 %v760_v56, %v760_v56 }
 0x219   : > { %v862_v59 = vsel %vm512_vm0, %v773_v57, 0 }
 0x21a   : > { %871 = vmatpush.bf16.msrb.mxu2 %v862_v59 }
 0x21d   : > { %1610 = vmatmul.msk.bf16.vlgmr.msrb.gmra.mxu2 %vm508_vm1, %v2212_v44 }
 0x21e   : > { %986 = vmatpush.bf16.msra.mxu2 %v1746_v58  ;;  %v763_v61 = vpop.f32.mrf.mxu3 }
 0x21f   : > { %v774_v62 = vpack.c.bf16 %v763_v61, %v763_v61 }
 0x221   : > { %v878_v0 = vsel %vm512_vm0, %v774_v62, 0 }
 0x222   : > { %987 = vmatpush.bf16.msra.mxu2 %v1745_v60  ;;  %887 = vmatpush.bf16.msra.mxu1 %v878_v0 }
 0x225   : > { %1611 = vmatmul.msk.bf16.vlgmr.msra.gmra.mxu1 %vm508_vm1, %v2218_v50 }
 0x226   : > { %988 = vmatpush.bf16.msra.mxu2 %v1744_v63  ;;  %v765_v2 = vpop.f32.mrf.mxu3 }
 0x227   : > { %v775_v3 = vpack.c.bf16 %v765_v2, %v765_v2 }
 0x229   : > { %v894_v4 = vsel %vm512_vm0, %v775_v3, 0 }
 0x22a   : > { %989 = vmatpush.bf16.msra.mxu2 %v1743_v1  ;;  %903 = vmatpush.bf16.msrb.mxu1 %v894_v4 }
 0x22e   : > { %990 = vmatpush.bf16.msra.mxu2 %v1742_v5 }
 0x232   : > { %991 = vmatpush.bf16.msra.mxu2 %v1741_v6 }
 0x235   : > { %1612 = vmatmul.msk.bf16.vlgmr.msrb.gmra.mxu1 %vm508_vm1, %v2224_v55 }
 0x236   : > { %992 = vmatpush.bf16.msra.mxu2 %v1740_v7 }
 0x23a   : > { %993 = vmatpush.bf16.msra.mxu2 %v1739_v8 }
 0x272   : > { %v793_v9 = vpop.f32.mrf.mxu1 }
 0x273   : > { %v794_v12 = vadd.f32 %v1835_v11, %v793_v9 }
 0x275   : > { %v909_v16 = vmax.f32 %v794_v12, 0.0  ;;  %v1752_v12 = vld [vmem:[%s2353_s4 + $0x28] sm:$0xff] }
 0x27a   : > { %v795_v10 = vpop.f32.mrf.mxu1 }
 0x280   : > { %v809_v13 = vpop.f32.mrf.mxu2 }
 0x281   : > { %v810_v14 = vadd.f32 %v1835_v11, %v809_v13 }
 0x282   : > { %v825_v15 = vpop.f32.mrf.mxu1 }
 0x283   : > { %v910_v17 = vmax.f32 %v810_v14, 0.0  ;;  %v826_v21 = vadd.f32 %v1835_v11, %v825_v15 }
 0x285   : > { %v934_v18 = vpack.c.bf16 %v910_v17, %v909_v16  ;;  %v911_v26 = vmax.f32 %v826_v21, 0.0  ;;  %v1750_v16 = vld [vmem:[%s2353_s4 + $0x18] sm:$0xff]  ;;  %v1749_v17 = vld [vmem:[%s2353_s4 + $0x10] sm:$0xff]  ;;  %v1836_v21 = vld [vmem:[%s2352_s3 + $0x2] ss:$0 sm:$0xff] }
 0x287   : > { %994 = vmatmul.bf16.vlgmr.msra.gmra.mxu2 %v934_v18 }
 0x288   : > { %v811_v19 = vpop.f32.mrf.mxu2 }
 0x28a   : > { %v827_v20 = vpop.f32.mrf.mxu1 }
 0x290   : > { %v841_v22 = vpop.f32.mrf.mxu2 }
 0x291   : > { %v842_v24 = vadd.f32 %v1835_v11, %v841_v22  ;;  %v1748_v22 = vld [vmem:[%s2353_s4 + $0x8] sm:$0xff] }
 0x292   : > { %v857_v25 = vpop.f32.mrf.mxu1 }
 0x293   : > { %v912_v28 = vmax.f32 %v842_v24, 0.0  ;;  %v858_v33 = vadd.f32 %v1835_v11, %v857_v25  ;;  %v1747_v25 = vld [vmem:[%s2353_s4] sm:$0xff] }
 0x295   : > { %v935_v29 = vpack.c.bf16 %v912_v28, %v911_v26  ;;  %v913_v38 = vmax.f32 %v858_v33, 0.0 }
 0x297   : > { %999 = vmatmul.bf16.gmra.mxu2 %v935_v29 }
 0x298   : > { %v843_v30 = vpop.f32.mrf.mxu2 }
 0x29a   : > { %v859_v32 = vpop.f32.mrf.mxu1 }
 0x29b   : > { %v1762_v32 = vld [vmem:[#allocation7 + $0x38] sm:$0xff] }
 0x2a0   : > { %v873_v34 = vpop.f32.mrf.mxu2 }
 0x2a1   : > { %v874_v36 = vadd.f32 %v1835_v11, %v873_v34 }
 0x2a2   : > { %v889_v37 = vpop.f32.mrf.mxu1 }
 0x2a3   : > { %v914_v40 = vmax.f32 %v874_v36, 0.0  ;;  %v890_v45 = vadd.f32 %v1835_v11, %v889_v37  ;;  %v1761_v37 = vld [vmem:[#allocation7 + $0x30] sm:$0xff] }
 0x2a5   : > { %v936_v41 = vpack.c.bf16 %v914_v40, %v913_v38  ;;  %v915_v48 = vmax.f32 %v890_v45, 0.0 }
 0x2a7   : > { %1004 = vmatmul.bf16.gmra.mxu2 %v936_v41 }
 0x2a8   : > { %v875_v42 = vpop.f32.mrf.mxu2 }
 0x2aa   : > { %v891_v43 = vpop.f32.mrf.mxu1 }
 0x2b2   : > { %v905_v46 = vpop.f32.mrf.mxu1 }
 0x2b3   : > { %v906_v47 = vadd.f32 %v1835_v11, %v905_v46 }
 0x2b5   : > { %v916_v49 = vmax.f32 %v906_v47, 0.0  ;;  %v1760_v47 = vld [vmem:[#allocation7 + $0x28] sm:$0xff] }
 0x2b7   : > { %v937_v51 = vpack.c.bf16 %v916_v49, %v915_v48 }
 0x2b9   : > { %1009 = vmatmul.bf16.gmra.mxu2 %v937_v51 }
 0x2ba   : > { %v907_v52 = vpop.f32.mrf.mxu1 }
 0x30a   : > { %v995_v53 = vpop.f32.mrf.mxu2 }
 0x30b   : > { %v1015_v54 = vpack.c.bf16 %v995_v53, %v995_v53 }
 0x30d   : > { %v1029_v56 = vsel %vm512_vm0, %v1015_v54, 0 }
 0x30e   : > { %1038 = vmatpush.bf16.msrb.mxu0 %v1029_v56 }
 0x311   : > { %1646 = vmatmul.msk.bf16.vlgmr.msrb.gmra.mxu0 %vm508_vm1, %v2182_v23 }
 0x312   : > { %v997_v57 = vpop.f32.mrf.mxu2 }
 0x313   : > { %v1016_v58 = vpack.c.bf16 %v997_v57, %v997_v57 }
 0x315   : > { %v1045_v59 = vsel %vm512_vm0, %v1016_v58, 0  ;;  %v1759_v58 = vld [vmem:[#allocation7 + $0x20] sm:$0xff] }
 0x316   : > { %1054 = vmatpush.bf16.msra.mxu1 %v1045_v59 }
 0x319   : > { %1647 = vmatmul.msk.bf16.vlgmr.msra.gmra.mxu1 %vm508_vm1, %v2188_v27 }
 0x31a   : > { %v1000_v60 = vpop.f32.mrf.mxu2 }
 0x31b   : > { %v1017_v61 = vpack.c.bf16 %v1000_v60, %v1000_v60 }
 0x31d   : > { %v1061_v62 = vsel %vm512_vm0, %v1017_v61, 0 }
 0x31e   : > { %1070 = vmatpush.bf16.msrb.mxu3 %v1061_v62 }
 0x321   : > { %1648 = vmatmul.msk.bf16.vlgmr.msrb.gmra.mxu3 %vm508_vm1, %v2194_v31 }
 0x322   : > { %v1002_v63 = vpop.f32.mrf.mxu2 }
 0x323   : > { %v1018_v0 = vpack.c.bf16 %v1002_v63, %v1002_v63 }
 0x325   : > { %v1077_v23 = vsel %vm512_vm0, %v1018_v0, 0 }
 0x326   : > { %1086 = vmatpush.bf16.msra.mxu0 %v1077_v23 }
 0x329   : > { %1649 = vmatmul.msk.bf16.vlgmr.msra.gmra.mxu0 %vm508_vm1, %v2200_v35 }
 0x32a   : > { %v1005_v1 = vpop.f32.mrf.mxu2 }
 0x32b   : > { %v1019_v2 = vpack.c.bf16 %v1005_v1, %v1005_v1 }
 0x32d   : > { %v1093_v27 = vsel %vm512_vm0, %v1019_v2, 0 }
 0x32e   : > { %1102 = vmatpush.bf16.msrb.mxu1 %v1093_v27  ;;  %v1758_v27 = vld [vmem:[#allocation7 + $0x18] sm:$0xff] }
 0x331   : > { %1650 = vmatmul.msk.bf16.vlgmr.msrb.gmra.mxu1 %vm508_vm1, %v2206_v39 }
 0x332   : > { %v1007_v3 = vpop.f32.mrf.mxu2 }
 0x333   : > { %v1020_v4 = vpack.c.bf16 %v1007_v3, %v1007_v3 }
 0x335   : > { %v1109_v31 = vsel %vm512_vm0, %v1020_v4, 0 }
 0x336   : > { %1118 = vmatpush.bf16.msra.mxu3 %v1109_v31 }
 0x339   : > { %1651 = vmatmul.msk.bf16.vlgmr.msra.gmra.mxu3 %vm508_vm1, %v2212_v44  ;;  %v1754_v44 = vld [vmem:[%s2353_s4 + $0x38] sm:$0xff] }
 0x33a   : > { %1303 = vmatpush.bf16.msrb.mxu3 %v1754_v44 }
 0x33c   : > { %v1010_v5 = vpop.f32.mrf.mxu2 }
 0x33d   : > { %v1021_v6 = vpack.c.bf16 %v1010_v5, %v1010_v5 }
 0x33f   : > { %v1125_v35 = vsel %vm512_vm0, %v1021_v6, 0 }
 0x340   : > { %1134 = vmatpush.bf16.msrb.mxu0 %v1125_v35 }
 0x343   : > { %1652 = vmatmul.msk.bf16.vlgmr.msrb.gmra.mxu0 %vm508_vm1, %v2218_v50  ;;  %v1753_v50 = vld [vmem:[%s2353_s4 + $0x30] sm:$0xff] }
 0x344   : > { %v1012_v7 = vpop.f32.mrf.mxu2  ;;  %1304 = vmatpush.bf16.msrb.mxu3 %v1753_v50  ;;  %1386 = vmatpush.bf16.msra.mxu0 %v1762_v32  ;;  %v1755_v32 = vld [vmem:[#allocation7] sm:$0xff] }
 0x345   : > { %v1022_v8 = vpack.c.bf16 %v1012_v7, %v1012_v7 }
 0x347   : > { %v1141_v39 = vsel %vm512_vm0, %v1022_v8, 0 }
 0x348   : > { %1150 = vmatpush.bf16.msra.mxu1 %v1141_v39  ;;  %1305 = vmatpush.bf16.msrb.mxu3 %v1752_v12 }
 0x349   : > { %1387 = vmatpush.bf16.msra.mxu0 %v1761_v37 }
 0x34b   : > { %1653 = vmatmul.msk.bf16.vlgmr.msra.gmra.mxu1 %vm508_vm1, %v2224_v55  ;;  %v1751_v55 = vld [vmem:[%s2353_s4 + $0x20] sm:$0xff] }
 0x34c   : > { %1306 = vmatpush.bf16.msrb.mxu3 %v1751_v55 }
 0x34d   : > { %1388 = vmatpush.bf16.msra.mxu0 %v1760_v47 }
 0x350   : > { %1307 = vmatpush.bf16.msrb.mxu3 %v1750_v16 }
 0x351   : > { %1389 = vmatpush.bf16.msra.mxu0 %v1759_v58 }
 0x354   : > { %1308 = vmatpush.bf16.msrb.mxu3 %v1749_v17 }
 0x355   : > { %1390 = vmatpush.bf16.msra.mxu0 %v1758_v27 }
 0x358   : > { %1309 = vmatpush.bf16.msrb.mxu3 %v1748_v22 }
 0x35c   : > { %1310 = vmatpush.bf16.msrb.mxu3 %v1747_v25 }
 0x38e   : > { %v1040_v9 = vpop.f32.mrf.mxu0 }
 0x38f   : > { %v1041_v29 = vadd.f32 %v1836_v21, %v1040_v9 }
 0x391   : > { %v1164_v38 = vrot.slane %v1041_v29, 1 }
 0x393   : > { %v1180_v48 = vmul.f32 %v1164_v38, %v1041_v29 }
 0x395   : > { %v1188_v59 = vpack.c.bf16 %v1180_v48, %v1180_v48 }
 0x396   : > { %v1056_v10 = vpop.f32.mrf.mxu1  ;;  %v1042_v11 = vpop.f32.mrf.mxu0 }
 0x397   : > { %v1057_v24 = vadd.f32 %v1836_v21, %v1056_v10  ;;  %v1224_v3 = vunpack.c.l.b16 %v1188_v59  ;;  %v1757_v10 = vld [vmem:[#allocation7 + $0x10] sm:$0xff] }
 0x398   : > { %1391 = vmatpush.bf16.msra.mxu0 %v1757_v10 }
 0x399   : > { %v1165_v30 = vrot.slane %v1057_v24, 1 }
 0x39b   : > { %v1181_v40 = vmul.f32 %v1165_v30, %v1057_v24  ;;  %v1756_v30 = vld [vmem:[#allocation7 + $0x8] sm:$0xff] }
 0x39c   : > { %1392 = vmatpush.bf16.msra.mxu0 %v1756_v30 }
 0x39d   : > { %v1189_v49 = vpack.c.bf16 %v1181_v40, %v1181_v40 }
 0x39e   : > { %v1058_v13 = vpop.f32.mrf.mxu1 }
 0x39f   : > { %v1225_v60 = vunpack.c.l.b16 %v1189_v49 }
 0x3a0   : > { %1393 = vmatpush.bf16.msra.mxu0 %v1755_v32 }
 0x3a1   : > { %v1232_v4 = vrot.slane %v1225_v60, 7 }
 0x3a3   : > { %v1234_v11 = vsel %vm1233_vm2, %v1232_v4, %v1224_v3 }
 0x3a4   : > { %v1072_v14 = vpop.f32.mrf.mxu3 }
 0x3a5   : > { %v1073_v26 = vadd.f32 %v1836_v21, %v1072_v14 }
 0x3a6   : > { %v1088_v15 = vpop.f32.mrf.mxu0 }
 0x3a7   : > { %v1089_v33 = vadd.f32 %v1836_v21, %v1088_v15  ;;  %v1166_v34 = vrot.slane %v1073_v26, 1 }
 0x3a9   : > { %v1167_v42 = vrot.slane %v1089_v33, 1  ;;  %v1182_v45 = vmul.f32 %v1166_v34, %v1073_v26 }
 0x3ab   : > { %v1183_v53 = vmul.f32 %v1167_v42, %v1089_v33  ;;  %v1190_v56 = vpack.c.bf16 %v1182_v45, %v1182_v45  ;;  %v1837_v33 = vld [vmem:[%s2354_s5] ss:$0 sm:$0xff] }
 0x3ac   : > { %v1074_v18 = vpop.f32.mrf.mxu3 }
 0x3ad   : > { %v1191_v0 = vpack.c.bf16 %v1183_v53, %v1183_v53  ;;  %v1226_v1 = vunpack.c.l.b16 %v1190_v56 }
 0x3ae   : > { %v1104_v19 = vpop.f32.mrf.mxu1  ;;  %v1090_v20 = vpop.f32.mrf.mxu0 }
 0x3af   : > { %v1105_v36 = vadd.f32 %v1836_v21, %v1104_v19  ;;  %v1227_v7 = vunpack.c.l.b16 %v1191_v0  ;;  %v1235_v39 = vrot.slane %v1226_v1, 6 }
 0x3b1   : > { %v1168_v46 = vrot.slane %v1105_v36, 1  ;;  %v1238_v13 = vrot.slane %v1227_v7, 5  ;;  %v1237_v14 = vsel %vm1236_vm3, %v1235_v39, %v1234_v11 }
 0x3b3   : > { %v1184_v57 = vmul.f32 %v1168_v46, %v1105_v36  ;;  %v1240_v20 = vsel %vm1239_vm4, %v1238_v13, %v1237_v14 }
 0x3b5   : > { %v1192_v2 = vpack.c.bf16 %v1184_v57, %v1184_v57 }
 0x3b6   : > { %v1106_v28 = vpop.f32.mrf.mxu1 }
 0x3b7   : > { %v1228_v9 = vunpack.c.l.b16 %v1192_v2 }
 0x3b9   : > { %v1241_v15 = vrot.slane %v1228_v9, 4 }
 0x3bb   : > { %v1243_v22 = vsel %vm1242_vm5, %v1241_v15, %v1240_v20 }
 0x3bc   : > { %v1120_v41 = vpop.f32.mrf.mxu3 }
 0x3bd   : > { %v1121_v43 = vadd.f32 %v1836_v21, %v1120_v41  ;;  %v1838_v41 = vld [vmem:[%s2356_s7] ss:$0 sm:$0xff] }
 0x3bf   : > { %v1169_v51 = vrot.slane %v1121_v43, 1 }
 0x3c0   : > { %v1136_v52 = vpop.f32.mrf.mxu0 }
 0x3c1   : > { %v1137_v54 = vadd.f32 %v1836_v21, %v1136_v52  ;;  %v1185_v61 = vmul.f32 %v1169_v51, %v1121_v43 }
 0x3c3   : > { %v1170_v62 = vrot.slane %v1137_v54, 1  ;;  %v1193_v31 = vpack.c.bf16 %v1185_v61, %v1185_v61 }
 0x3c4   : > { %v1122_v63 = vpop.f32.mrf.mxu3 }
 0x3c5   : > { %v1186_v23 = vmul.f32 %v1170_v62, %v1137_v54  ;;  %v1229_v44 = vunpack.c.l.b16 %v1193_v31 }
 0x3c7   : > { %v1194_v5 = vpack.c.bf16 %v1186_v23, %v1186_v23  ;;  %v1244_v16 = vrot.slane %v1229_v44, 3 }
 0x3c8   : > { %v1152_v6 = vpop.f32.mrf.mxu1  ;;  %v1138_v35 = vpop.f32.mrf.mxu0 }
 0x3c9   : > { %v1153_v8 = vadd.f32 %v1836_v21, %v1152_v6  ;;  %v1230_v12 = vunpack.c.l.b16 %v1194_v5  ;;  %v1246_v24 = vsel %vm1245_vm6, %v1244_v16, %v1243_v22 }
 0x3cb   : > { %v1171_v50 = vrot.slane %v1153_v8, 1  ;;  %v1247_v18 = vrot.slane %v1230_v12, 2 }
 0x3cd   : > { %v1187_v55 = vmul.f32 %v1171_v50, %v1153_v8  ;;  %v1249_v26 = vsel %vm1248_vm7, %v1247_v18, %v1246_v24 }
 0x3cf   : > { %v1195_v17 = vpack.c.bf16 %v1187_v55, %v1187_v55 }
 0x3d0   : > { %v1154_v19 = vpop.f32.mrf.mxu1 }
 0x3d1   : > { %v1231_v21 = vunpack.c.l.b16 %v1195_v17 }
 0x3d3   : > { %v1250_v25 = vrot.slane %v1231_v21, 1 }
 0x3d5   : > { %v1252_v28 = vsel %vm1251_vm8, %v1250_v25, %v1249_v26 }
 0x3d6   : > { %v1253_v29 = vpack.c.b16 %v1252_v28, %v1252_v28 }
 0x3d8   : > { %1311 = vmatmul.bf16.vlgmr.msrb.gmra.mxu3 %v1253_v29 }
 0x45b   : > { %v1312_v34 = vpop.f32.mrf.mxu3 }
 0x45c   : > { %v1313_v36 = vadd.f32 %v1837_v33, %v1312_v34 }
 0x45e   : > { %v1316_v37 = vmax.f32 %v1313_v36, 0.0 }
 0x460   : > { %v1317_v38 = vpack.c.bf16 %v1316_v37, %v1316_v37 }
 0x462   : > { %1394 = vmatmul.bf16.vlgmr.msra.gmra.mxu0 %v1317_v38 }
 0x463   : > { %v1314_v40 = vpop.f32.mrf.mxu3 }
 0x4df   : > { %v1395_v42 = vpop.f32.mrf.mxu0 }
 0x4e0   : > { %v1396_v43 = vadd.f32 %v1838_v41, %v1395_v42 }
 0x4e2   : > { %1399 = vst [vmem:[%s374_s21] sm:$0xff] %v1396_v43 }
 0x4e3   : > { %1956 = shalt.err (!%p1953_p12)
}
 0x4e4   : > { %1773 = dma.vmem_to_hbm [thread:$0]  (%p2118_p3), %s1414_s22, 128, %s1416_s17, %s1401_s23  }
 0x4e7   : > { %v1397_v45 = vpop.f32.mrf.mxu0 }
 0x4e8 PF: > { %s1427_s19 = sand.u32 1, %s1987_s27   ;;  %p2367_p13 = scmp.ge.s32.totalorder %s1999_s30, 2 }
 0x4e9   : > { %s1428_s13 = scalar_lea.sflag [#allocation4], %s1427_s19 }
 0x4ea   : > { %p1787_p0 = pnand %p2367_p13, %p2087_p6 }
 0x4ec   : > { %p1788_p5 = pneg %p1787_p0 }
 0x4ee   : > { %1982 = dma.done.wait (%p1788_p5), %s1428_s13, 128  }
 0x4ef   : > { %1984 = vsyncadd (%p1788_p5), %s1428_s13, 4294967168  ;;  %p22_p7 = scmp.ge.s32.totalorder %s2108_s26, 4   ;;  %s2368_s27 = smov %s1991_s28 }
 0x4f0   : > { %s2369_s28 = smov %s1995_s29  ;;  %s2370_s29 = smov %s2124_s15 }
 0x4f1   : > { %s2371_s30 = smov %s2108_s26  ;;  %24 = sbr.rel (!%p22_p7) target bundleno = 9 (0x9), region = 112 }
 0x4f6   :  { %1434 = vsyncpa [#allocation3], 1 }
 0x4f7   :  { %1436 = vsyncpa [#allocation3 + $0x1], 1 }
 0x4f8   :  { %1437 = vsyncpa [#allocation6], 1 }
 0x4f9   :  { %1438 = vsyncpa [#allocation4], 1 }
 0x4fa   :  { %1440 = vsyncpa [#allocation4 + $0x1], 1 }

</bundles_post_ra>
